<compile_context>
chip_gen: v5e
topology: v5e:2x2
jax: 0.10.0
libtpu: 0.0.40
codegen_flags: <defaults>
</compile_context>

<pallas_src>
import functools

import jax
import jax.numpy as jnp
from jax.experimental import pallas as pl
from jax.experimental.pallas import tpu as pltpu


# ------------------------------------------------------------------
# Fused kernel: atom encoder -> L x (GCNConv [+ folded BN] [+ ReLU]) -> mean pool -> linear
# ------------------------------------------------------------------
def fused_gcn_graph_kernel(onehot_ref, emb_ref, a_ref, w_ref, b_ref,
                           pool_ref, lin_w_ref, lin_b_ref, o_ref, *, num_layers):
    # AtomEncoder: sum of per-feature embedding rows == one-hot matmul (single MXU pass).
    h = jnp.dot(onehot_ref[...], emb_ref[...],
                preferred_element_type=jnp.float32)                 # [N, D] f32 accumulator

    a = a_ref[...]                                                  # [N, N] bf16, VMEM-resident

    # Layer loop is static/unrolled (num_layers is small); h never leaves VMEM.
    for layer in range(num_layers):
        xw = jnp.dot(h.astype(jnp.bfloat16), w_ref[layer],
                     preferred_element_type=jnp.float32)            # X @ W'  (MXU, bf16 in / f32 acc)
        h = jnp.dot(a, xw.astype(jnp.bfloat16),
                    preferred_element_type=jnp.float32) + b_ref[layer]   # A_hat @ (XW') + b'
        if layer < num_layers - 1:
            # BatchNorm already folded into W'/b'; dropout is identity in eval mode.
            h = jnp.maximum(h, 0.0)

    # global_mean_pool as P @ h (P rows pre-divided by per-graph node counts), then Linear.
    pooled = jnp.dot(pool_ref[...], h, preferred_element_type=jnp.float32)     # [G, D]
    o_ref[...] = jnp.dot(pooled, lin_w_ref[...],
                         preferred_element_type=jnp.float32) + lin_b_ref[...]  # [G, O]


def fused_forward(onehot, emb_stacked, a_hat, w_stacked, b_stacked,
                  pool_mat, lin_w, lin_b, *, num_layers):
    g = pool_mat.shape[0]
    o = lin_w.shape[1]
    vmem = pl.BlockSpec(memory_space=pltpu.MemorySpace.VMEM)   # full operand, VMEM-resident
    return pl.pallas_call(
        functools.partial(fused_gcn_graph_kernel, num_layers=num_layers),
        out_shape=jax.ShapeDtypeStruct((g, o), jnp.float32),
        in_specs=[vmem] * 8,
        out_specs=vmem,
    )(onehot, emb_stacked, a_hat, w_stacked, b_stacked, pool_mat, lin_w, lin_b)


# ------------------------------------------------------------------
# Glue: graph preprocessing + BN folding (plain JAX, cheap one-time work)
# ------------------------------------------------------------------
def build_normalized_adjacency(edge_index, num_nodes):
    """Dense D^{-1/2} (A + I) D^{-1/2}, exactly PyG GCNConv normalization."""
    src, dst = edge_index[0], edge_index[1]
    a = jnp.zeros((num_nodes, num_nodes), jnp.float32)
    a = a.at[dst, src].add(1.0)                           # message src -> dst
    a = a + jnp.eye(num_nodes, dtype=jnp.float32)         # self loops
    deg = a.sum(axis=1)
    dinv = jnp.where(deg > 0, jax.lax.rsqrt(deg), 0.0)
    return a * dinv[:, None] * dinv[None, :]


def build_pool_matrix(batch, num_graphs, num_nodes):
    onehot = (batch[None, :] == jnp.arange(num_graphs)[:, None]).astype(jnp.float32)
    counts = jnp.maximum(onehot.sum(axis=1, keepdims=True), 1.0)
    return onehot / counts                                # [G, N], rows mean-normalized


def fold_bn(w, b, gamma, beta, rmean, rvar, eps=1e-5):
    """Fold eval-mode BatchNorm into conv weight/bias: BN(A(XW)+b) == A(X W') + b'."""
    scale = gamma * jax.lax.rsqrt(rvar + eps)             # [1, D]
    return w * scale, (b - rmean) * scale + beta


def gcn_graph_forward(params, x_atoms, edge_index, batch, num_graphs):
    n, f = x_atoms.shape
    vocab = params["emb_tables"][0].shape[0]
    num_layers = len(params["conv_w"])

    a_hat = build_normalized_adjacency(edge_index, n).astype(jnp.bfloat16)
    pool_mat = build_pool_matrix(batch, num_graphs, n)

    # Atom encoder as one-hot matmul: one-hot [N, F*vocab] @ stacked tables [F*vocab, D].
    onehot = (x_atoms[:, :, None] == jnp.arange(vocab, dtype=x_atoms.dtype)[None, None, :])
    onehot = onehot.reshape(n, f * vocab).astype(jnp.bfloat16)
    emb_stacked = jnp.concatenate(params["emb_tables"], axis=0).astype(jnp.bfloat16)

    # Fold eval-mode BN into per-layer weights/biases and stack for in-kernel indexing.
    w_list, b_list = [], []
    for layer in range(num_layers):
        w, b = params["conv_w"][layer], params["conv_b"][layer]
        if layer < num_layers - 1:
            w, b = fold_bn(w, b, params["bn_gamma"][layer], params["bn_beta"][layer],
                           params["bn_mean"][layer], params["bn_var"][layer])
        w_list.append(w.astype(jnp.bfloat16))
        b_list.append(b.astype(jnp.float32))
    w_stacked = jnp.stack(w_list)                         # [L, D, D] bf16
    b_stacked = jnp.stack(b_list)                         # [L, 1, D] f32

    return fused_forward(onehot, emb_stacked, a_hat, w_stacked, b_stacked,
                         pool_mat, params["lin_w"], params["lin_b"],
                         num_layers=num_layers)


# ------------------------------------------------------------------
# Deterministic parameter construction
# ------------------------------------------------------------------
def init_params(key, hidden_dim, output_dim, num_layers, num_atom_feats=9, vocab=16):
    keys = jax.random.split(key, 8 + num_atom_feats + 6 * num_layers)
    ki = iter(keys)

    emb_tables = [jax.random.normal(next(ki), (vocab, hidden_dim), jnp.float32) * 0.1
                  for _ in range(num_atom_feats)]

    conv_w, conv_b = [], []
    for _ in range(num_layers):
        scale = (2.0 / (hidden_dim + hidden_dim)) ** 0.5
        conv_w.append(jax.random.normal(next(ki), (hidden_dim, hidden_dim), jnp.float32) * scale)
        conv_b.append(jnp.zeros((1, hidden_dim), jnp.float32))

    # Non-trivial eval-mode BN statistics (exercise the BN fold).
    bn_gamma, bn_beta, bn_mean, bn_var = [], [], [], []
    for _ in range(num_layers - 1):
        bn_gamma.append(1.0 + 0.1 * jax.random.normal(next(ki), (1, hidden_dim), jnp.float32))
        bn_beta.append(0.1 * jax.random.normal(next(ki), (1, hidden_dim), jnp.float32))
        bn_mean.append(0.1 * jax.random.normal(next(ki), (1, hidden_dim), jnp.float32))
        bn_var.append(jax.random.uniform(next(ki), (1, hidden_dim), jnp.float32, 0.5, 1.5))

    lin_scale = (1.0 / hidden_dim) ** 0.5
    lin_w = jax.random.uniform(next(ki), (hidden_dim, output_dim), jnp.float32,
                               -lin_scale, lin_scale)
    lin_b = jax.random.uniform(next(ki), (1, output_dim), jnp.float32,
                               -lin_scale, lin_scale)

    return dict(emb_tables=emb_tables, conv_w=conv_w, conv_b=conv_b,
                bn_gamma=bn_gamma, bn_beta=bn_beta, bn_mean=bn_mean, bn_var=bn_var,
                lin_w=lin_w, lin_b=lin_b)


# ------------------------------------------------------------------
if __name__ == "__main__":
    hidden_dim, output_dim, num_layers = 32, 8, 3
    num_nodes, num_edges, num_graphs, num_atom_feats, vocab = 64, 128, 2, 9, 16

    key = jax.random.PRNGKey(0)
    k_feat, k_edge, k_param = jax.random.split(key, 3)

    # synthetic batched graph data
    x_atoms = jax.random.randint(k_feat, (num_nodes, num_atom_feats), 0, vocab, jnp.int32)
    edge_index = jax.random.randint(k_edge, (2, num_edges), 0, num_nodes, jnp.int32)
    batch = jnp.concatenate([jnp.zeros((40,), jnp.int32), jnp.ones((24,), jnp.int32)])

    params = init_params(k_param, hidden_dim, output_dim, num_layers,
                         num_atom_feats=num_atom_feats, vocab=vocab)

    forward = jax.jit(gcn_graph_forward, static_argnums=(4,))
    out = forward(params, x_atoms, edge_index, batch, num_graphs)
    out = jax.block_until_ready(out)
    assert out.shape == (num_graphs, output_dim)
    assert bool(jnp.all(jnp.isfinite(out)))
    # TODO(synk): training-mode dropout / BN batch statistics are not modeled (eval semantics only).
    print("KERNEL_OK")
</pallas_src>

<mosaic_0001>
module attributes {stable_mosaic.version = 11 : i64} {
  func.func @fused_gcn_graph_kernel(%arg0: memref<64x144xbf16, #tpu.memory_space<vmem>>, %arg1: memref<144x32xbf16, #tpu.memory_space<vmem>>, %arg2: memref<64x64xbf16, #tpu.memory_space<vmem>>, %arg3: memref<3x32x32xbf16, #tpu.memory_space<vmem>>, %arg4: memref<3x1x32xf32, #tpu.memory_space<vmem>>, %arg5: memref<2x64xf32, #tpu.memory_space<vmem>>, %arg6: memref<32x8xf32, #tpu.memory_space<vmem>>, %arg7: memref<1x8xf32, #tpu.memory_space<vmem>>, %arg8: memref<2x8xf32, #tpu.memory_space<vmem>>) attributes {dimension_semantics = [], scalar_prefetch = 0 : i64, scratch_operands = 0 : i64, tpu.core_type = #tpu.core_type<tc>} {
    %c0 = arith.constant 0 : index
    %c0_0 = arith.constant 0 : index
    %0 = vector.load %arg0[%c0, %c0_0] : memref<64x144xbf16, #tpu.memory_space<vmem>>, vector<64x144xbf16>
    %c0_1 = arith.constant 0 : index
    %c0_2 = arith.constant 0 : index
    %1 = vector.load %arg1[%c0_1, %c0_2] : memref<144x32xbf16, #tpu.memory_space<vmem>>, vector<144x32xbf16>
    %cst = arith.constant dense<0.000000e+00> : vector<64x32xf32>
    %2 = tpu.matmul %0, %1, %cst {dimension_numbers = #tpu.dot_dimension_numbers<[1], [0], [0], [1], [0, 0, 1, 1], [], []>} : vector<64x144xbf16>, vector<144x32xbf16>, vector<64x32xf32> -> vector<64x32xf32>
    %c0_3 = arith.constant 0 : index
    %c0_4 = arith.constant 0 : index
    %3 = vector.load %arg2[%c0_3, %c0_4] : memref<64x64xbf16, #tpu.memory_space<vmem>>, vector<64x64xbf16>
    %4 = arith.truncf %2 : vector<64x32xf32> to vector<64x32xbf16>
    %c0_5 = arith.constant 0 : index
    %c0_6 = arith.constant 0 : index
    %c0_7 = arith.constant 0 : index
    %5 = vector.load %arg3[%c0_5, %c0_6, %c0_7] : memref<3x32x32xbf16, #tpu.memory_space<vmem>>, vector<1x32x32xbf16>
    %6 = vector.shape_cast %5 : vector<1x32x32xbf16> to vector<32x32xbf16>
    %cst_8 = arith.constant dense<0.000000e+00> : vector<64x32xf32>
    %7 = tpu.matmul %4, %6, %cst_8 {dimension_numbers = #tpu.dot_dimension_numbers<[1], [0], [0], [1], [0, 0, 1, 1], [], []>} : vector<64x32xbf16>, vector<32x32xbf16>, vector<64x32xf32> -> vector<64x32xf32>
    %8 = arith.truncf %7 : vector<64x32xf32> to vector<64x32xbf16>
    %cst_9 = arith.constant dense<0.000000e+00> : vector<64x32xf32>
    %9 = tpu.matmul %3, %8, %cst_9 {dimension_numbers = #tpu.dot_dimension_numbers<[1], [0], [0], [1], [0, 0, 1, 1], [], []>} : vector<64x64xbf16>, vector<64x32xbf16>, vector<64x32xf32> -> vector<64x32xf32>
    %c0_10 = arith.constant 0 : index
    %c0_11 = arith.constant 0 : index
    %c0_12 = arith.constant 0 : index
    %10 = vector.load %arg4[%c0_10, %c0_11, %c0_12] : memref<3x1x32xf32, #tpu.memory_space<vmem>>, vector<1x1x32xf32>
    %11 = vector.shape_cast %10 : vector<1x1x32xf32> to vector<1x32xf32>
    %12 = vector.broadcast %11 : vector<1x32xf32> to vector<64x32xf32>
    %13 = arith.addf %9, %12 : vector<64x32xf32>
    %cst_13 = arith.constant 0.000000e+00 : f32
    %14 = vector.broadcast %cst_13 : f32 to vector<64x32xf32>
    %15 = arith.maximumf %13, %14 : vector<64x32xf32>
    %16 = arith.truncf %15 : vector<64x32xf32> to vector<64x32xbf16>
    %c1 = arith.constant 1 : index
    %c0_14 = arith.constant 0 : index
    %c0_15 = arith.constant 0 : index
    %17 = vector.load %arg3[%c1, %c0_14, %c0_15] : memref<3x32x32xbf16, #tpu.memory_space<vmem>>, vector<1x32x32xbf16>
    %18 = vector.shape_cast %17 : vector<1x32x32xbf16> to vector<32x32xbf16>
    %cst_16 = arith.constant dense<0.000000e+00> : vector<64x32xf32>
    %19 = tpu.matmul %16, %18, %cst_16 {dimension_numbers = #tpu.dot_dimension_numbers<[1], [0], [0], [1], [0, 0, 1, 1], [], []>} : vector<64x32xbf16>, vector<32x32xbf16>, vector<64x32xf32> -> vector<64x32xf32>
    %20 = arith.truncf %19 : vector<64x32xf32> to vector<64x32xbf16>
    %cst_17 = arith.constant dense<0.000000e+00> : vector<64x32xf32>
    %21 = tpu.matmul %3, %20, %cst_17 {dimension_numbers = #tpu.dot_dimension_numbers<[1], [0], [0], [1], [0, 0, 1, 1], [], []>} : vector<64x64xbf16>, vector<64x32xbf16>, vector<64x32xf32> -> vector<64x32xf32>
    %c1_18 = arith.constant 1 : index
    %c0_19 = arith.constant 0 : index
    %c0_20 = arith.constant 0 : index
    %22 = vector.load %arg4[%c1_18, %c0_19, %c0_20] : memref<3x1x32xf32, #tpu.memory_space<vmem>>, vector<1x1x32xf32>
    %23 = vector.shape_cast %22 : vector<1x1x32xf32> to vector<1x32xf32>
    %24 = vector.broadcast %23 : vector<1x32xf32> to vector<64x32xf32>
    %25 = arith.addf %21, %24 : vector<64x32xf32>
    %cst_21 = arith.constant 0.000000e+00 : f32
    %26 = vector.broadcast %cst_21 : f32 to vector<64x32xf32>
    %27 = arith.maximumf %25, %26 : vector<64x32xf32>
    %28 = arith.truncf %27 : vector<64x32xf32> to vector<64x32xbf16>
    %c2 = arith.constant 2 : index
    %c0_22 = arith.constant 0 : index
    %c0_23 = arith.constant 0 : index
    %29 = vector.load %arg3[%c2, %c0_22, %c0_23] : memref<3x32x32xbf16, #tpu.memory_space<vmem>>, vector<1x32x32xbf16>
    %30 = vector.shape_cast %29 : vector<1x32x32xbf16> to vector<32x32xbf16>
    %cst_24 = arith.constant dense<0.000000e+00> : vector<64x32xf32>
    %31 = tpu.matmul %28, %30, %cst_24 {dimension_numbers = #tpu.dot_dimension_numbers<[1], [0], [0], [1], [0, 0, 1, 1], [], []>} : vector<64x32xbf16>, vector<32x32xbf16>, vector<64x32xf32> -> vector<64x32xf32>
    %32 = arith.truncf %31 : vector<64x32xf32> to vector<64x32xbf16>
    %cst_25 = arith.constant dense<0.000000e+00> : vector<64x32xf32>
    %33 = tpu.matmul %3, %32, %cst_25 {dimension_numbers = #tpu.dot_dimension_numbers<[1], [0], [0], [1], [0, 0, 1, 1], [], []>} : vector<64x64xbf16>, vector<64x32xbf16>, vector<64x32xf32> -> vector<64x32xf32>
    %c2_26 = arith.constant 2 : index
    %c0_27 = arith.constant 0 : index
    %c0_28 = arith.constant 0 : index
    %34 = vector.load %arg4[%c2_26, %c0_27, %c0_28] : memref<3x1x32xf32, #tpu.memory_space<vmem>>, vector<1x1x32xf32>
    %35 = vector.shape_cast %34 : vector<1x1x32xf32> to vector<1x32xf32>
    %36 = vector.broadcast %35 : vector<1x32xf32> to vector<64x32xf32>
    %37 = arith.addf %33, %36 : vector<64x32xf32>
    %c0_29 = arith.constant 0 : index
    %c0_30 = arith.constant 0 : index
    %38 = vector.load %arg5[%c0_29, %c0_30] : memref<2x64xf32, #tpu.memory_space<vmem>>, vector<2x64xf32>
    %cst_31 = arith.constant dense<0.000000e+00> : vector<2x32xf32>
    %39 = tpu.matmul %38, %37, %cst_31 {dimension_numbers = #tpu.dot_dimension_numbers<[1], [0], [0], [1], [0, 0, 1, 1], [], []>} : vector<2x64xf32>, vector<64x32xf32>, vector<2x32xf32> -> vector<2x32xf32>
    %c0_32 = arith.constant 0 : index
    %c0_33 = arith.constant 0 : index
    %40 = vector.load %arg6[%c0_32, %c0_33] : memref<32x8xf32, #tpu.memory_space<vmem>>, vector<32x8xf32>
    %cst_34 = arith.constant dense<0.000000e+00> : vector<2x8xf32>
    %41 = tpu.matmul %39, %40, %cst_34 {dimension_numbers = #tpu.dot_dimension_numbers<[1], [0], [0], [1], [0, 0, 1, 1], [], []>} : vector<2x32xf32>, vector<32x8xf32>, vector<2x8xf32> -> vector<2x8xf32>
    %c0_35 = arith.constant 0 : index
    %c0_36 = arith.constant 0 : index
    %42 = vector.load %arg7[%c0_35, %c0_36] : memref<1x8xf32, #tpu.memory_space<vmem>>, vector<1x8xf32>
    %43 = vector.broadcast %42 : vector<1x8xf32> to vector<2x8xf32>
    %44 = arith.addf %41, %43 : vector<2x8xf32>
    %c0_37 = arith.constant 0 : index
    %c0_38 = arith.constant 0 : index
    %45 = vector.load %arg8[%c0_37, %c0_38] : memref<2x8xf32, #tpu.memory_space<vmem>>, vector<2x8xf32>
    tpu.vector_store %arg8[%c0_37, %c0_38], %44 {strides = array<i32>} : memref<2x8xf32, #tpu.memory_space<vmem>>, vector<2x8xf32>,
    return
  }
}

</mosaic_0001>

<bundles_post_ra>
// kernel: gcn_graph_forward.1
= control target key start
LH: loop header
LB: loop body
LE: loop exit
PB: predicated region body
PF: predicated region fallthrough
CT: control target
= control target key end

     0   :  { %vm147_vm0 = vcmask 130048   ;;  %s1084_s0 = inlined_call_operand.vmem [shape: bf16[64,144], index: 0, kind: input, shape index: {}]   ;;  %s1085_s1 = inlined_call_operand.vmem [shape: bf16[144,32], index: 1, kind: input, shape index: {}]   ;;  %s1086_s2 = inlined_call_operand.vmem [shape: bf16[64,64], index: 2, kind: input, shape index: {}]   ;;  %s1087_s3 = inlined_call_operand.vmem [shape: bf16[3,32,32], index: 3, kind: input, shape index: {}]   ;;  %s1088_s4 = inlined_call_operand.vmem [shape: f32[3,1,32], index: 4, kind: input, shape index: {}]   ;;  %s1089_s5 = inlined_call_operand.vmem [shape: f32[2,64], index: 5, kind: input, shape index: {}]   ;;  %s1090_s6 = inlined_call_operand.vmem [shape: f32[32,8], index: 6, kind: input, shape index: {}]   ;;  %s1091_s7 = inlined_call_operand.vmem [shape: f32[1,8], index: 7, kind: input, shape index: {}]   ;;  %s1092_s8 = inlined_call_operand.hbm [shape: f32[2,8], index: 8, kind: output, shape index: {}]  }
   0x1   :  { %v810_v0 = vld [vmem:[%s1085_s1 + $0x38] sm:$0xff]  ;;  %v809_v1 = vld [vmem:[%s1085_s1 + $0x30] sm:$0xff]  ;;  %v811_v2 = vld [vmem:[%s1085_s1 + $0x40] sm:$0xff] }
   0x2   :  { %160 = vmatpush.bf16.msra.mxu0 %v810_v0  ;;  %v795_v3 = vld [vmem:[%s1084_s0 + $0x4] sm:$0xf]  ;;  %v651_v4 = vld [vmem:[%s1084_s0 + $0x8] sm:$0xf0]  ;;  %196 = vmatpush.bf16.msra.mxu1 %v811_v2 }
   0x3   :  { %v654_v5 = vor.u32 %v795_v3, %v651_v4  ;;  %v808_v6 = vld [vmem:[%s1085_s1 + $0x28] sm:$0xff] }
   0x5   :  { %715 = vmatmul.msk.bf16.vlgmr.msra.gmra.mxu1 %vm147_vm0, %v654_v5 }
   0x6   :  { %161 = vmatpush.bf16.msra.mxu0 %v809_v1 }
   0x7   :  { %13 = vsyncpa [#allocation3], 0  ;;  %v807_v7 = vld [vmem:[%s1085_s1 + $0x20] sm:$0xff]  ;;  %v806_v8 = vld [vmem:[%s1085_s1 + $0x18] sm:$0xff]  ;;  %vm246_vm1 = vcmask 261120   ;;  %vm316_vm2 = vcmask 523264  }
   0x8   :  { %v797_v9 = vld [vmem:[%s1084_s0 + $0x14] sm:$0xf]  ;;  %v659_v10 = vld [vmem:[%s1084_s0 + $0x18] sm:$0xf0]  ;;  %v804_v13 = vld [vmem:[%s1085_s1 + $0x8] sm:$0xff]  ;;  %s853_s18 = smov [#allocation2]  }
   0x9   :  { %v805_v11 = vld [vmem:[%s1085_s1 + $0x10] sm:$0xff]  ;;  %v662_v12 = vor.u32 %v797_v9, %v659_v10  ;;  %v803_v14 = vld [vmem:[%s1085_s1] sm:$0xff]  ;;  %v796_v16 = vld [vmem:[%s1084_s0 + $0x4] sm:$0xf0]  ;;  %s636_s19 = sshll.u32 %s853_s18, 4  ;;  %s638_s22 = sshll.u32 %s1092_s8, 4  ;;  %s637_s19 = int_to_ptr.vmem [resolvable:$true] %s636_s19  ;;  %s639_s22 = int_to_ptr.hbm [resolvable:$true] %s638_s22 }
   0xa   :  { %162 = vmatpush.bf16.msra.mxu0 %v808_v6  ;;  %v649_v15 = vld [vmem:[%s1084_s0] sm:$0xf]  ;;  %v799_v18 = vld [vmem:[%s1084_s0 + $0x24] sm:$0xf]  ;;  %v667_v19 = vld [vmem:[%s1084_s0 + $0x28] sm:$0xf0] }
   0xb   :  { %v650_v17 = vor.u32 %v796_v16, %v649_v15  ;;  %v670_v20 = vor.u32 %v799_v18, %v667_v19  ;;  %v657_v21 = vld [vmem:[%s1084_s0 + $0x10] sm:$0xf]  ;;  %v798_v22 = vld [vmem:[%s1084_s0 + $0x14] sm:$0xf0]  ;;  %v801_v24 = vld [vmem:[%s1084_s0 + $0x34] sm:$0xf] }
   0xc   :  { %v658_v23 = vor.u32 %v798_v22, %v657_v21  ;;  %v675_v25 = vld [vmem:[%s1084_s0 + $0x38] sm:$0xf0]  ;;  %v665_v27 = vld [vmem:[%s1084_s0 + $0x20] sm:$0xf]  ;;  %v800_v28 = vld [vmem:[%s1084_s0 + $0x24] sm:$0xf0] }
   0xd   :  { %v678_v26 = vor.u32 %v801_v24, %v675_v25  ;;  %v666_v29 = vor.u32 %v800_v28, %v665_v27  ;;  %v673_v30 = vld [vmem:[%s1084_s0 + $0x30] sm:$0xf]  ;;  %v802_v31 = vld [vmem:[%s1084_s0 + $0x34] sm:$0xf0]  ;;  %v817_v33 = vld [vmem:[%s1087_s3 + $0x8] sm:$0xff]  ;;  %vm629_vm3 = vcmask 58368  }
   0xe   :  { %163 = vmatpush.bf16.msra.mxu0 %v807_v7  ;;  %v674_v32 = vor.u32 %v802_v31, %v673_v30  ;;  %265 = vmatpush.bf16.msra.mxu2 %v817_v33  ;;  %v816_v34 = vld [vmem:[%s1087_s3] sm:$0xff]  ;;  %v819_v15 = vld [vmem:[%s1087_s3 + $0x18] sm:$0xff]  ;;  %v818_v16 = vld [vmem:[%s1087_s3 + $0x10] sm:$0xff] }
   0xf   :  { %405 = vmatpush.bf16.msrb.mxu1 %v819_v15  ;;  %v823_v18 = vld [vmem:[%s1088_s4] ss:$0 sm:$0xff] }
  0x12   :  { %164 = vmatpush.bf16.msra.mxu0 %v806_v8  ;;  %266 = vmatpush.bf16.msra.mxu2 %v816_v34 }
  0x13   :  { %406 = vmatpush.bf16.msrb.mxu1 %v818_v16 }
  0x15   :  { %716 = vmatmul.msk.bf16.gmra.mxu1 %vm147_vm0, %v662_v12  ;;  %v998_v12 = vld [vmem:[%s1086_s2 + $0x8] sm:$0xff] }
  0x16   :  { %165 = vmatpush.bf16.msra.mxu0 %v805_v11  ;;  %v991_v11 = vld [vmem:[%s1086_s2] sm:$0xff] }
  0x1a   :  { %166 = vmatpush.bf16.msra.mxu0 %v804_v13  ;;  %v1005_v13 = vld [vmem:[%s1086_s2 + $0x10] sm:$0xff] }
  0x1e   :  { %167 = vmatpush.bf16.msra.mxu0 %v803_v14  ;;  %v1012_v14 = vld [vmem:[%s1086_s2 + $0x18] sm:$0xff] }
  0x21   :  { %168 = vmatmul.bf16.vlgmr.msra.gmra.mxu0 %v650_v17 }
  0x25   :  { %717 = vmatmul.msk.bf16.gmra.mxu1 %vm147_vm0, %v670_v20 }
  0x31   :  { %173 = vmatmul.bf16.gmra.mxu0 %v658_v23 }
  0x35   :  { %718 = vmatmul.msk.bf16.gmra.mxu1 %vm147_vm0, %v678_v26 }
  0x41   :  { %178 = vmatmul.bf16.gmra.mxu0 %v666_v29 }
  0x51   :  { %183 = vmatmul.bf16.gmra.mxu0 %v674_v32 }
  0x82   :  { %v198_v35 = vpop.f32.mrf.mxu1 }
  0x8a   :  { %v200_v36 = vpop.f32.mrf.mxu1 }
  0x92   :  { %v203_v38 = vpop.f32.mrf.mxu1 }
  0x9a   :  { %v205_v44 = vpop.f32.mrf.mxu1 }
  0x9e   :  { %v169_v37 = vpop.f32.mrf.mxu0 }
  0x9f   :  { %v199_v40 = vadd.f32 %v198_v35, %v169_v37 }
  0xa2   :  { %v208_v48 = vpop.f32.mrf.mxu1 }
  0xa6   :  { %v171_v39 = vpop.f32.mrf.mxu0 }
  0xa7   :  { %v201_v41 = vadd.f32 %v200_v36, %v171_v39 }
  0xa9   :  { %v226_v42 = vpack.c.bf16 %v201_v41, %v199_v40 }
  0xaa   :  { %v210_v51 = vpop.f32.mrf.mxu1 }
  0xab   :  { %727 = vmatmul.msk.bf16.vlgmr.msra.gmra.mxu2 %vm246_vm1, %v226_v42 }
  0xae   :  { %v174_v43 = vpop.f32.mrf.mxu0 }
  0xaf   :  { %v204_v46 = vadd.f32 %v203_v38, %v174_v43 }
  0xb2   :  { %v213_v56 = vpop.f32.mrf.mxu1 }
  0xb6   :  { %v176_v45 = vpop.f32.mrf.mxu0 }
  0xb7   :  { %v206_v47 = vadd.f32 %v205_v44, %v176_v45 }
  0xb9   :  { %v227_v49 = vpack.c.bf16 %v206_v47, %v204_v46 }
  0xba   :  { %v215_v58 = vpop.f32.mrf.mxu1 }
  0xbb   :  { %728 = vmatmul.msk.bf16.gmra.mxu2 %vm246_vm1, %v227_v49 }
  0xbe   :  { %v179_v50 = vpop.f32.mrf.mxu0 }
  0xbf   :  { %v209_v53 = vadd.f32 %v208_v48, %v179_v50 }
  0xc6   :  { %v181_v52 = vpop.f32.mrf.mxu0 }
  0xc7   :  { %v211_v54 = vadd.f32 %v210_v51, %v181_v52 }
  0xc9   :  { %v228_v55 = vpack.c.bf16 %v211_v54, %v209_v53 }
  0xcb   :  { %729 = vmatmul.msk.bf16.gmra.mxu2 %vm246_vm1, %v228_v55 }
  0xce   :  { %v184_v57 = vpop.f32.mrf.mxu0 }
  0xcf   :  { %v214_v60 = vadd.f32 %v213_v56, %v184_v57 }
  0xd6   :  { %v186_v59 = vpop.f32.mrf.mxu0 }
  0xd7   :  { %v216_v61 = vadd.f32 %v215_v58, %v186_v59  ;;  %v821_v58 = vld [vmem:[%s1087_s3 + $0x28] sm:$0xff]  ;;  %v820_v59 = vld [vmem:[%s1087_s3 + $0x20] sm:$0xff] }
  0xd9   :  { %v229_v62 = vpack.c.bf16 %v216_v61, %v214_v60  ;;  %v824_v61 = vld [vmem:[%s1088_s4 + $0x1] ss:$0 sm:$0xff] }
  0xdb   :  { %730 = vmatmul.msk.bf16.gmra.mxu2 %vm246_vm1, %v229_v62 }
 0x12e   :  { %v268_v63 = vpop.f32.mrf.mxu2 }
 0x136   :  { %v270_v0 = vpop.f32.mrf.mxu2 }
 0x137   :  { %v288_v10 = vpack.c.bf16 %v270_v0, %v268_v63 }
 0x13e   :  { %v273_v1 = vpop.f32.mrf.mxu2 }
 0x146   :  { %v275_v2 = vpop.f32.mrf.mxu2 }
 0x147   :  { %v289_v9 = vpack.c.bf16 %v275_v2, %v273_v1 }
 0x14e   :  { %v278_v3 = vpop.f32.mrf.mxu2 }
 0x156   :  { %v280_v4 = vpop.f32.mrf.mxu2 }
 0x157   :  { %v290_v8 = vpack.c.bf16 %v280_v4, %v278_v3 }
 0x15e   :  { %v283_v5 = vpop.f32.mrf.mxu2 }
 0x166   :  { %v285_v6 = vpop.f32.mrf.mxu2 }
 0x167   :  { %v291_v7 = vpack.c.bf16 %v285_v6, %v283_v5 }
 0x169   :  { %333 = vmatpush.bf16.msra.mxu3 %v291_v7 }
 0x16d   :  { %334 = vmatpush.bf16.msra.mxu3 %v290_v8 }
 0x171   :  { %335 = vmatpush.bf16.msra.mxu3 %v289_v9 }
 0x175   :  { %336 = vmatpush.bf16.msra.mxu3 %v288_v10 }
 0x178   :  { %747 = vmatmul.msk.bf16.vlgmr.msra.gmra.mxu3 %vm316_vm2, %v991_v11 }
 0x179   :  { %513 = vmatpush.bf16.msrb.mxu3 %v821_v58  ;;  %v574_v58 = vld [vmem:[%s1089_s5] sm:$0x3] }
 0x17d   :  { %514 = vmatpush.bf16.msrb.mxu3 %v820_v59 }
 0x188   :  { %748 = vmatmul.msk.bf16.gmra.mxu3 %vm316_vm2, %v998_v12 }
 0x198   :  { %749 = vmatmul.msk.bf16.gmra.mxu3 %vm316_vm2, %v1005_v13 }
 0x1a8   :  { %750 = vmatmul.msk.bf16.gmra.mxu3 %vm316_vm2, %v1012_v14 }
 0x1fb   :  { %v338_v17 = vpop.f32.mrf.mxu3 }
 0x1fc   :  { %v339_v19 = vadd.f32 %v823_v18, %v338_v17 }
 0x1fe   :  { %v358_v22 = vmax.f32 %v339_v19, 0.0 }
 0x203   :  { %v340_v20 = vpop.f32.mrf.mxu3 }
 0x204   :  { %v341_v21 = vadd.f32 %v823_v18, %v340_v20 }
 0x206   :  { %v359_v23 = vmax.f32 %v341_v21, 0.0 }
 0x208   :  { %v366_v24 = vpack.c.bf16 %v359_v23, %v358_v22 }
 0x20a   :  { %763 = vmatmul.msk.bf16.vlgmr.msrb.gmra.mxu1 %vm246_vm1, %v366_v24 }
 0x20b   :  { %v343_v25 = vpop.f32.mrf.mxu3 }
 0x20c   :  { %v344_v26 = vadd.f32 %v823_v18, %v343_v25 }
 0x20e   :  { %v360_v29 = vmax.f32 %v344_v26, 0.0 }
 0x213   :  { %v345_v27 = vpop.f32.mrf.mxu3 }
 0x214   :  { %v346_v28 = vadd.f32 %v823_v18, %v345_v27 }
 0x216   :  { %v361_v30 = vmax.f32 %v346_v28, 0.0 }
 0x218   :  { %v367_v31 = vpack.c.bf16 %v361_v30, %v360_v29 }
 0x21a   :  { %764 = vmatmul.msk.bf16.gmra.mxu1 %vm246_vm1, %v367_v31 }
 0x21b   :  { %v348_v32 = vpop.f32.mrf.mxu3 }
 0x21c   :  { %v349_v33 = vadd.f32 %v823_v18, %v348_v32 }
 0x21e   :  { %v362_v36 = vmax.f32 %v349_v33, 0.0 }
 0x223   :  { %v350_v34 = vpop.f32.mrf.mxu3 }
 0x224   :  { %v351_v35 = vadd.f32 %v823_v18, %v350_v34 }
 0x226   :  { %v363_v37 = vmax.f32 %v351_v35, 0.0 }
 0x228   :  { %v368_v38 = vpack.c.bf16 %v363_v37, %v362_v36 }
 0x22a   :  { %765 = vmatmul.msk.bf16.gmra.mxu1 %vm246_vm1, %v368_v38 }
 0x22b   :  { %v353_v39 = vpop.f32.mrf.mxu3 }
 0x22c   :  { %v354_v40 = vadd.f32 %v823_v18, %v353_v39 }
 0x22e   :  { %v364_v43 = vmax.f32 %v354_v40, 0.0 }
 0x233   :  { %v355_v41 = vpop.f32.mrf.mxu3 }
 0x234   :  { %v356_v42 = vadd.f32 %v823_v18, %v355_v41 }
 0x236   :  { %v365_v44 = vmax.f32 %v356_v42, 0.0 }
 0x238   :  { %v369_v45 = vpack.c.bf16 %v365_v44, %v364_v43 }
 0x23a   :  { %766 = vmatmul.msk.bf16.gmra.mxu1 %vm246_vm1, %v369_v45 }
 0x287   :  { %v408_v46 = vpop.f32.mrf.mxu1 }
 0x28f   :  { %v410_v47 = vpop.f32.mrf.mxu1 }
 0x290   :  { %v428_v57 = vpack.c.bf16 %v410_v47, %v408_v46  ;;  %v601_v47 = vld [vmem:[%s1090_s6 + $0x18] sm:$0xff] }
 0x297   :  { %v413_v48 = vpop.f32.mrf.mxu1 }
 0x29f   :  { %v415_v49 = vpop.f32.mrf.mxu1 }
 0x2a0   :  { %v429_v56 = vpack.c.bf16 %v415_v49, %v413_v48  ;;  %v825_v48 = vld [vmem:[%s1088_s4 + $0x2] ss:$0 sm:$0xff] }
 0x2a7   :  { %v418_v50 = vpop.f32.mrf.mxu1 }
 0x2af   :  { %v420_v51 = vpop.f32.mrf.mxu1 }
 0x2b0   :  { %v430_v55 = vpack.c.bf16 %v420_v51, %v418_v50 }
 0x2b7   :  { %v423_v52 = vpop.f32.mrf.mxu1 }
 0x2bf   :  { %v425_v53 = vpop.f32.mrf.mxu1 }
 0x2c0   :  { %v431_v54 = vpack.c.bf16 %v425_v53, %v423_v52 }
 0x2c2   :  { %441 = vmatpush.bf16.msrb.mxu2 %v431_v54 }
 0x2c6   :  { %442 = vmatpush.bf16.msrb.mxu2 %v430_v55 }
 0x2ca   :  { %443 = vmatpush.bf16.msrb.mxu2 %v429_v56 }
 0x2ce   :  { %444 = vmatpush.bf16.msrb.mxu2 %v428_v57 }
 0x2d1   :  { %768 = vmatmul.msk.bf16.vlgmr.msrb.gmra.mxu2 %vm316_vm2, %v991_v11 }
 0x2d2   :  { %621 = vmatpush.msra.mxu2 %v601_v47 }
 0x2e1   :  { %769 = vmatmul.msk.bf16.gmra.mxu2 %vm316_vm2, %v998_v12 }
 0x2f1   :  { %770 = vmatmul.msk.bf16.gmra.mxu2 %vm316_vm2, %v1005_v13 }
 0x301   :  { %771 = vmatmul.msk.bf16.gmra.mxu2 %vm316_vm2, %v1012_v14 }
 0x354   :  { %v446_v60 = vpop.f32.mrf.mxu2 }
 0x355   :  { %v447_v62 = vadd.f32 %v824_v61, %v446_v60  ;;  %v826_v60 = vld [vmem:[%s1091_s7] ss:$0 sm:$0xff] }
 0x357   :  { %v466_v1 = vmax.f32 %v447_v62, 0.0 }
 0x35c   :  { %v448_v63 = vpop.f32.mrf.mxu2 }
 0x35d   :  { %v449_v0 = vadd.f32 %v824_v61, %v448_v63 }
 0x35f   :  { %v467_v2 = vmax.f32 %v449_v0, 0.0 }
 0x361   :  { %v474_v3 = vpack.c.bf16 %v467_v2, %v466_v1 }
 0x363   :  { %784 = vmatmul.msk.bf16.vlgmr.msrb.gmra.mxu3 %vm246_vm1, %v474_v3 }
 0x364   :  { %v451_v4 = vpop.f32.mrf.mxu2 }
 0x365   :  { %v452_v5 = vadd.f32 %v824_v61, %v451_v4 }
 0x367   :  { %v468_v8 = vmax.f32 %v452_v5, 0.0 }
 0x36c   :  { %v453_v6 = vpop.f32.mrf.mxu2 }
 0x36d   :  { %v454_v7 = vadd.f32 %v824_v61, %v453_v6 }
 0x36f   :  { %v469_v9 = vmax.f32 %v454_v7, 0.0 }
 0x371   :  { %v475_v10 = vpack.c.bf16 %v469_v9, %v468_v8 }
 0x373   :  { %785 = vmatmul.msk.bf16.gmra.mxu3 %vm246_vm1, %v475_v10 }
 0x374   :  { %v456_v15 = vpop.f32.mrf.mxu2 }
 0x375   :  { %v457_v16 = vadd.f32 %v824_v61, %v456_v15 }
 0x377   :  { %v470_v19 = vmax.f32 %v457_v16, 0.0 }
 0x37c   :  { %v458_v17 = vpop.f32.mrf.mxu2 }
 0x37d   :  { %v459_v18 = vadd.f32 %v824_v61, %v458_v17 }
 0x37f   :  { %v471_v20 = vmax.f32 %v459_v18, 0.0 }
 0x381   :  { %v476_v21 = vpack.c.bf16 %v471_v20, %v470_v19 }
 0x383   :  { %786 = vmatmul.msk.bf16.gmra.mxu3 %vm246_vm1, %v476_v21 }
 0x384   :  { %v461_v22 = vpop.f32.mrf.mxu2 }
 0x385   :  { %v462_v23 = vadd.f32 %v824_v61, %v461_v22 }
 0x387   :  { %v472_v26 = vmax.f32 %v462_v23, 0.0 }
 0x38c   :  { %v463_v24 = vpop.f32.mrf.mxu2 }
 0x38d   :  { %v464_v25 = vadd.f32 %v824_v61, %v463_v24 }
 0x38f   :  { %v473_v27 = vmax.f32 %v464_v25, 0.0 }
 0x391   :  { %v477_v28 = vpack.c.bf16 %v473_v27, %v472_v26 }
 0x393   :  { %787 = vmatmul.msk.bf16.gmra.mxu3 %vm246_vm1, %v477_v28 }
 0x3e6   :  { %v516_v29 = vpop.f32.mrf.mxu3 }
 0x3ee   :  { %v518_v30 = vpop.f32.mrf.mxu3 }
 0x3ef   :  { %v536_v40 = vpack.c.bf16 %v518_v30, %v516_v29 }
 0x3f6   :  { %v521_v31 = vpop.f32.mrf.mxu3 }
 0x3fe   :  { %v523_v32 = vpop.f32.mrf.mxu3 }
 0x3ff   :  { %v537_v39 = vpack.c.bf16 %v523_v32, %v521_v31 }
 0x406   :  { %v526_v33 = vpop.f32.mrf.mxu3 }
 0x40e   :  { %v528_v34 = vpop.f32.mrf.mxu3 }
 0x40f   :  { %v538_v38 = vpack.c.bf16 %v528_v34, %v526_v33 }
 0x416   :  { %v531_v35 = vpop.f32.mrf.mxu3 }
 0x41e   :  { %v533_v36 = vpop.f32.mrf.mxu3 }
 0x41f   :  { %v539_v37 = vpack.c.bf16 %v533_v36, %v531_v35 }
 0x421   :  { %549 = vmatpush.bf16.msrb.mxu0 %v539_v37 }
 0x425   :  { %550 = vmatpush.bf16.msrb.mxu0 %v538_v38 }
 0x429   :  { %551 = vmatpush.bf16.msrb.mxu0 %v537_v39 }
 0x42d   :  { %552 = vmatpush.bf16.msrb.mxu0 %v536_v40 }
 0x430   :  { %789 = vmatmul.msk.bf16.vlgmr.msrb.gmra.mxu0 %vm316_vm2, %v991_v11  ;;  %v600_v11 = vld [vmem:[%s1090_s6 + $0x10] sm:$0xff] }
 0x431   :  { %622 = vmatpush.msra.mxu2 %v600_v11 }
 0x440   :  { %790 = vmatmul.msk.bf16.gmra.mxu0 %vm316_vm2, %v998_v12  ;;  %v599_v12 = vld [vmem:[%s1090_s6 + $0x8] sm:$0xff] }
 0x441   :  { %623 = vmatpush.msra.mxu2 %v599_v12 }
 0x450   :  { %791 = vmatmul.msk.bf16.gmra.mxu0 %vm316_vm2, %v1005_v13  ;;  %v598_v13 = vld [vmem:[%s1090_s6] sm:$0xff] }
 0x451   :  { %624 = vmatpush.msra.mxu2 %v598_v13 }
 0x460   :  { %792 = vmatmul.msk.bf16.gmra.mxu0 %vm316_vm2, %v1012_v14 }
 0x4ad   :  { %v554_v41 = vpop.f32.mrf.mxu0 }
 0x4ae   :  { %v555_v57 = vadd.f32 %v825_v48, %v554_v41 }
 0x4b5   :  { %v556_v42 = vpop.f32.mrf.mxu0 }
 0x4b6   :  { %v557_v56 = vadd.f32 %v825_v48, %v556_v42 }
 0x4bd   :  { %v559_v43 = vpop.f32.mrf.mxu0 }
 0x4be   :  { %v560_v55 = vadd.f32 %v825_v48, %v559_v43 }
 0x4c5   :  { %v561_v44 = vpop.f32.mrf.mxu0 }
 0x4c6   :  { %v562_v54 = vadd.f32 %v825_v48, %v561_v44 }
 0x4cd   :  { %v564_v45 = vpop.f32.mrf.mxu0 }
 0x4ce   :  { %v565_v53 = vadd.f32 %v825_v48, %v564_v45 }
 0x4d5   :  { %v566_v46 = vpop.f32.mrf.mxu0 }
 0x4d6   :  { %v567_v52 = vadd.f32 %v825_v48, %v566_v46 }
 0x4dd   :  { %v569_v14 = vpop.f32.mrf.mxu0 }
 0x4de   :  { %v570_v51 = vadd.f32 %v825_v48, %v569_v14 }
 0x4e5   :  { %v571_v49 = vpop.f32.mrf.mxu0 }
 0x4e6   :  { %v572_v50 = vadd.f32 %v825_v48, %v571_v49 }
 0x4e8   :  { %586 = vmatpush.msra.mxu1 %v572_v50 }
 0x4ea   :  { %587 = vmatpush.msra.mxu1 %v570_v51 }
 0x4ec   :  { %588 = vmatpush.msra.mxu1 %v567_v52 }
 0x4ee   :  { %589 = vmatpush.msra.mxu1 %v565_v53 }
 0x4f0   :  { %590 = vmatpush.msra.mxu1 %v562_v54 }
 0x4f2   :  { %591 = vmatpush.msra.mxu1 %v560_v55 }
 0x4f4   :  { %592 = vmatpush.msra.mxu1 %v557_v56 }
 0x4f6   :  { %593 = vmatpush.msra.mxu1 %v555_v57 }
 0x4f7   :  { %793 = vmatmul.msk.f32.vlgmr.msra.gmra.mxu1 %vm316_vm2, %v574_v58 }
 0x574   :  { %v595_v59 = vpop.f32.mrf.mxu1 }
 0x575   :  { %794 = vmatmul.msk.f32.vlgmr.msra.gmra.mxu2 %vm246_vm1, %v595_v59 }
 0x5f8   :  { %v626_v61 = vpop.f32.mrf.mxu2 }
 0x5f9   :  { %v627_v62 = vadd.f32 %v826_v60, %v626_v61 }
 0x5fb   :  { %630 = vst.msk [vmem:[#allocation2] sm:$0x3] %vm629_vm3, %v627_v62 }
 0x5fc   :  { %641 = dma.vmem_to_hbm [thread:$0]  %s637_s19, 32, %s639_s22, [#allocation3]  }
 0x5fd   :  { %851 = dma.done.wait [#allocation3], 32  }
 0x5fe   :  { %852 = vsyncadd [#allocation3], 4294967264 }
 0x5ff   :  { %646 = vsyncpa [#allocation3], 1 }

</bundles_post_ra>
